<compile_context>
chip_gen: v7x
topology: tpu7x:2x2x1
jax: 0.10.0
libtpu: 0.0.40
codegen_flags: <defaults>
</compile_context>

<pallas_src>
import functools

import jax
import jax.numpy as jnp
from jax.experimental import pallas as pl
from jax.experimental.pallas import tpu as pltpu

_LANE = 128


# ---------------------------------------------------------------------------
# kernels
# ---------------------------------------------------------------------------
def _bn_scale_shift(stats, gamma, beta, inv_n, eps):
    """Reduce (num_tiles, 2, H) [sum, sumsq] partials -> fused scale/shift."""
    tot = jnp.sum(stats, axis=0)                       # (2, H)
    mean = tot[0:1, :] * inv_n                         # (1, H)
    var = jnp.maximum(tot[1:2, :] * inv_n - mean * mean, 0.0)
    scale = gamma * jax.lax.rsqrt(var + eps)
    shift = beta - mean * scale
    return scale, shift


def _enc1_kernel(x_ref, w_ref, h_ref, stats_ref):
    """h1 = x_kept @ W1_kept (bias dropped: cancels in BN1); BN1 partials."""
    h = jnp.dot(x_ref[...], w_ref[...], preferred_element_type=jnp.float32)
    stats_ref[0, 0:1, :] = jnp.sum(h, axis=0, keepdims=True)
    stats_ref[0, 1:2, :] = jnp.sum(h * h, axis=0, keepdims=True)
    h_ref[...] = h.astype(h_ref.dtype)


def _enc2_kernel(h1_ref, st1_ref, g1_ref, b1_ref, w_ref, h2_ref, stats_ref,
                 *, inv_n, eps):
    """a1 = relu(bn1(h1)); h2 = a1 @ W2 (bias cancels in BN2); BN2 partials."""
    sc, sh = _bn_scale_shift(st1_ref[...], g1_ref[...], b1_ref[...], inv_n, eps)
    a = jnp.maximum(h1_ref[...].astype(jnp.float32) * sc + sh, 0.0)
    h = jnp.dot(a.astype(w_ref.dtype), w_ref[...],
                preferred_element_type=jnp.float32)
    stats_ref[0, 0:1, :] = jnp.sum(h, axis=0, keepdims=True)
    stats_ref[0, 1:2, :] = jnp.sum(h * h, axis=0, keepdims=True)
    h2_ref[...] = h.astype(h2_ref.dtype)


def _head_kernel(h2_ref, st2_ref, g2_ref, b2_ref,
                 f1w_ref, f1b_ref, f2w_ref, f2b_ref,
                 f3w_ref, f3b_ref, f4w_ref, f4b_ref, out_ref,
                 *, inv_n, eps):
    """f = relu(bn2(h2)); classifier head; lane-dense padded log-softmax."""
    cd = f1w_ref.dtype
    sc, sh = _bn_scale_shift(st2_ref[...], g2_ref[...], b2_ref[...], inv_n, eps)
    f = jnp.maximum(h2_ref[...].astype(jnp.float32) * sc + sh, 0.0)
    f = jnp.maximum(jnp.dot(f.astype(cd), f1w_ref[...],
                            preferred_element_type=jnp.float32) + f1b_ref[...], 0.0)
    f = jnp.maximum(jnp.dot(f.astype(cd), f2w_ref[...],
                            preferred_element_type=jnp.float32) + f2b_ref[...], 0.0)
    f = jnp.maximum(jnp.dot(f.astype(cd), f3w_ref[...],
                            preferred_element_type=jnp.float32) + f3b_ref[...], 0.0)
    logits = jnp.dot(f.astype(cd), f4w_ref[...],
                     preferred_element_type=jnp.float32) + f4b_ref[...]
    # log_softmax over 128 padded lanes; padded columns carry a -1e30 bias so
    # exp() underflows to 0 and the wrapper slices them away.
    m = jnp.max(logits, axis=1, keepdims=True)
    z = logits - m
    lse = jnp.log(jnp.sum(jnp.exp(z), axis=1, keepdims=True))
    out_ref[...] = z - lse


# ---------------------------------------------------------------------------
# host helpers
# ---------------------------------------------------------------------------
def _pick_tile_m(n, target):
    """Largest multiple-of-8 divisor of n, <= target, leaving >=2 grid steps."""
    assert n % 8 == 0, "batch must be a multiple of 8"
    # TODO(synk): ragged batches (non multiple-of-8 N) would need masked stats.
    cap = min(target, n)
    if n >= 16:
        cap = min(cap, n // 2)  # keep >= 2 grid steps so v7x megacore can shard
    best = 8
    for t in range(8, cap + 1, 8):
        if n % t == 0:
            best = t
    return best


def _vmem_capacity_bytes():
    try:
        info = pltpu.get_tpu_info()
        for attr in ("vmem_capacity_bytes", "vmem_size_bytes", "vmem_bytes"):
            v = getattr(info, attr, None)
            if v:
                return int(v)
    except Exception:
        pass
    return 64 << 20  # conservative fallback: v7x per-TensorCore VMEM


def _vmem_limit(resident_bytes, stream_bytes, cap_bytes):
    """Residents single-buffered (Buffered(1)); streamed tiles double-buffered."""
    # TODO(synk): if `need` exceeds the cap at very large widths, shrink tile_m.
    need = resident_bytes + 2 * stream_bytes + (4 << 20)   # + compiler scratch
    return int(min(max(need, 16 << 20), (cap_bytes * 85) // 100))


def clnet_forward(x, params, *, mask_ratio=0.25, bn_eps=1e-5, tile_m=512,
                  compute_dtype=jnp.bfloat16):
    # TODO(synk): reference CLNet.forward calls self.pretrain(x) without the
    # required mask_ratio argument; we default it to 0.25 here.
    n, d = x.shape
    len_keep = int(d * (1.0 - mask_ratio))
    d_keep = d - len_keep
    assert d_keep >= 1, "mask_ratio leaves no live input columns"

    tile = _pick_tile_m(n, tile_m)
    num_tiles = n // tile

    h1_dim = params["l1w"].shape[1]
    h2_dim = params["l2w"].shape[1]
    classes = params["f4w"].shape[1]
    f3_out = params["f3w"].shape[1]
    assert classes <= _LANE and f3_out <= _LANE

    f32 = jnp.float32
    cd = compute_dtype
    isize = jnp.dtype(cd).itemsize
    inv_n = 1.0 / n

    # random_masking with ones-noise keeps the FIRST d_keep columns and sets
    # the LAST len_keep columns to the constant 1.0.  Both the constant-column
    # contribution and the l1/l2 biases are per-feature constants that cancel
    # exactly inside BatchNorm1d, so only x[:, :d_keep] @ W1[:d_keep] is
    # computed and no pre-BN bias is added.  K is zero-padded to the bf16
    # sublane pack (16) for clean MXU feed (numerically exact).
    d_keep_pad = -(-d_keep // 16) * 16
    pad_k = d_keep_pad - d_keep
    x_kept = jnp.pad(x[:, :d_keep], ((0, 0), (0, pad_k))).astype(cd)
    l1w_kept = jnp.pad(params["l1w"][:d_keep], ((0, pad_k), (0, 0))).astype(cd)
    l2w = params["l2w"].astype(cd)

    bn1g = params["bn1g"].astype(f32)
    bn1b = params["bn1b"].astype(f32)
    bn2g = params["bn2g"].astype(f32)
    bn2b = params["bn2b"].astype(f32)

    # Lane-dense classifier tail: pad f3 out / f4 in+out to 128 lanes; padded
    # f4 output columns carry a -1e30 bias so exp() underflows in log-softmax.
    f1w = params["f1w"].astype(cd)
    f1b = params["f1b"].astype(f32)
    f2w = params["f2w"].astype(cd)
    f2b = params["f2b"].astype(f32)
    f3w = jnp.pad(params["f3w"], ((0, 0), (0, _LANE - f3_out))).astype(cd)
    f3b = jnp.pad(params["f3b"], ((0, 0), (0, _LANE - f3_out))).astype(f32)
    f4w = jnp.pad(params["f4w"],
                  ((0, _LANE - f3_out), (0, _LANE - classes))).astype(cd)
    f4b = jnp.pad(params["f4b"], ((0, 0), (0, _LANE - classes)),
                  constant_values=-1e30).astype(f32)

    vmem_cap = _vmem_capacity_bytes()

    def row_spec(width):
        return pl.BlockSpec((tile, width), lambda i: (i, 0))

    def resident(shape):
        # Constant index_map across the grid -> single-buffer the operand
        # (halves resident VMEM; critical on v7x's 64 MiB at 4096x2048 widths).
        return pl.BlockSpec(shape, lambda i: (0,) * len(shape),
                            pipeline_mode=pl.Buffered(1))

    def stats_spec(width):
        return pl.BlockSpec((1, 2, width), lambda i: (i, 0, 0))

    def cparams(resident_bytes, stream_bytes):
        return pltpu.CompilerParams(
            dimension_semantics=("parallel",),          # megacore-shardable
            vmem_limit_bytes=_vmem_limit(resident_bytes, stream_bytes, vmem_cap))

    # ---- pass 1: h1 = x_kept @ W1_kept + BN1 partial statistics ------------
    res1 = d_keep_pad * h1_dim * isize
    str1 = (tile * d_keep_pad + tile * h1_dim) * isize + 2 * h1_dim * 4
    cost1 = pl.CostEstimate(
        flops=2 * n * d_keep_pad * h1_dim,
        transcendentals=0,
        bytes_accessed=(n * d_keep_pad + d_keep_pad * h1_dim + n * h1_dim) * isize
        + num_tiles * 2 * h1_dim * 4)
    h1, stats1 = pl.pallas_call(
        _enc1_kernel,
        grid_spec=pltpu.PrefetchScalarGridSpec(
            num_scalar_prefetch=0,
            grid=(num_tiles,),
            in_specs=[row_spec(d_keep_pad),
                      resident((d_keep_pad, h1_dim))],
            out_specs=[row_spec(h1_dim), stats_spec(h1_dim)]),
        out_shape=(jax.ShapeDtypeStruct((n, h1_dim), cd),
                   jax.ShapeDtypeStruct((num_tiles, 2, h1_dim), f32)),
        compiler_params=cparams(res1, str1),
        cost_estimate=cost1,
    )(x_kept, l1w_kept)

    # ---- pass 2: in-kernel BN1 scale/shift + relu, l2 matmul, BN2 partials --
    res2 = (num_tiles * 2 + 2) * h1_dim * 4 + h1_dim * h2_dim * isize
    str2 = (tile * h1_dim + tile * h2_dim) * isize + 2 * h2_dim * 4
    cost2 = pl.CostEstimate(
        flops=2 * n * h1_dim * h2_dim + 6 * n * h1_dim,
        transcendentals=0,
        bytes_accessed=(n * h1_dim + h1_dim * h2_dim + n * h2_dim) * isize
        + (num_tiles * 2 * (h1_dim + h2_dim) + 2 * h1_dim) * 4)
    h2, stats2 = pl.pallas_call(
        functools.partial(_enc2_kernel, inv_n=inv_n, eps=bn_eps),
        grid_spec=pltpu.PrefetchScalarGridSpec(
            num_scalar_prefetch=0,
            grid=(num_tiles,),
            in_specs=[row_spec(h1_dim),
                      resident((num_tiles, 2, h1_dim)),
                      resident((1, h1_dim)), resident((1, h1_dim)),
                      resident((h1_dim, h2_dim))],
            out_specs=[row_spec(h2_dim), stats_spec(h2_dim)]),
        out_shape=(jax.ShapeDtypeStruct((n, h2_dim), cd),
                   jax.ShapeDtypeStruct((num_tiles, 2, h2_dim), f32)),
        compiler_params=cparams(res2, str2),
        cost_estimate=cost2,
    )(h1, stats1, bn1g, bn1b, l2w)

    # ---- pass 3: in-kernel BN2 + relu, classifier head, padded log-softmax --
    head_k = h2_dim * _LANE + 3 * _LANE * _LANE
    res3 = ((num_tiles * 2 + 2) * h2_dim + 4 * _LANE) * 4 + head_k * isize
    str3 = tile * h2_dim * isize + tile * _LANE * 4
    cost3 = pl.CostEstimate(
        flops=2 * n * head_k + 10 * n * _LANE,
        transcendentals=n * _LANE,
        bytes_accessed=(n * h2_dim + head_k) * isize
        + (n * _LANE + num_tiles * 2 * h2_dim + 2 * h2_dim + 4 * _LANE) * 4)
    out_pad = pl.pallas_call(
        functools.partial(_head_kernel, inv_n=inv_n, eps=bn_eps),
        grid_spec=pltpu.PrefetchScalarGridSpec(
            num_scalar_prefetch=0,
            grid=(num_tiles,),
            in_specs=[row_spec(h2_dim),
                      resident((num_tiles, 2, h2_dim)),
                      resident((1, h2_dim)), resident((1, h2_dim)),
                      resident((h2_dim, _LANE)), resident((1, _LANE)),
                      resident((_LANE, _LANE)), resident((1, _LANE)),
                      resident((_LANE, _LANE)), resident((1, _LANE)),
                      resident((_LANE, _LANE)), resident((1, _LANE))],
            out_specs=row_spec(_LANE)),
        out_shape=jax.ShapeDtypeStruct((n, _LANE), f32),
        compiler_params=cparams(res3, str3),
        cost_estimate=cost3,
    )(h2, stats2, bn2g, bn2b, f1w, f1b, f2w, f2b, f3w, f3b, f4w, f4b)

    return out_pad[:, :classes]


# ---------------------------------------------------------------------------
# reference + params
# ---------------------------------------------------------------------------
def clnet_reference(x, params, *, mask_ratio=0.25, bn_eps=1e-5):
    """Pure-JAX f32 reference with the original module's semantics."""
    n, d = x.shape
    len_keep = int(d * (1.0 - mask_ratio))
    col = jnp.arange(d)[None, :]
    xm = jnp.where(col >= d - len_keep, jnp.float32(1.0), x)

    def dot(a, w):
        return jnp.dot(a, w, precision=jax.lax.Precision.HIGHEST)

    def bn_relu(h, g, b):
        mean = jnp.mean(h, axis=0, keepdims=True)
        var = jnp.mean((h - mean) ** 2, axis=0, keepdims=True)
        return jnp.maximum((h - mean) * jax.lax.rsqrt(var + bn_eps) * g + b, 0.0)

    h = dot(xm, params["l1w"]) + params["l1b"]
    h = bn_relu(h, params["bn1g"], params["bn1b"])
    h = dot(h, params["l2w"]) + params["l2b"]
    f = bn_relu(h, params["bn2g"], params["bn2b"])
    f = jnp.maximum(dot(f, params["f1w"]) + params["f1b"], 0.0)
    f = jnp.maximum(dot(f, params["f2w"]) + params["f2b"], 0.0)
    f = jnp.maximum(dot(f, params["f3w"]) + params["f3b"], 0.0)
    logits = dot(f, params["f4w"]) + params["f4b"]
    return jax.nn.log_softmax(logits, axis=1)


def _linear(key, fan_in, fan_out):
    kw, kb = jax.random.split(key)
    w = jax.random.normal(kw, (fan_in, fan_out), jnp.float32) / jnp.sqrt(
        jnp.float32(fan_in))
    b = 0.01 * jax.random.normal(kb, (1, fan_out), jnp.float32)
    return w, b


def init_params(key, drop_input, h1, h2, classes):
    # TODO(synk): the reference shapes are internally inconsistent
    # (DropNet.l2 outputs 2048 while CLNet.f1 expects 128); DropNet widths are
    # scaled down so that h2 == 128 and the forward is well-defined.
    keys = jax.random.split(key, 6)
    p = {}
    p["l1w"], p["l1b"] = _linear(keys[0], drop_input, h1)
    p["l2w"], p["l2b"] = _linear(keys[1], h1, h2)
    # BatchNorm affine params at PyTorch defaults (gamma=1, beta=0).
    p["bn1g"] = jnp.ones((1, h1), jnp.float32)
    p["bn1b"] = jnp.zeros((1, h1), jnp.float32)
    p["bn2g"] = jnp.ones((1, h2), jnp.float32)
    p["bn2b"] = jnp.zeros((1, h2), jnp.float32)
    p["f1w"], p["f1b"] = _linear(keys[2], h2, 128)
    p["f2w"], p["f2b"] = _linear(keys[3], 128, 128)
    p["f3w"], p["f3b"] = _linear(keys[4], 128, 64)
    p["f4w"], p["f4b"] = _linear(keys[5], 64, classes)
    return p


if __name__ == "__main__":
    key = jax.random.PRNGKey(0)
    k_param, k_x = jax.random.split(key)

    N = 512          # 2 grid steps of 256 rows (>=2 so v7x megacore can shard)
    DROP_INPUT = 64  # DropNet input_dim (small synthetic size)
    H1 = 256         # stands in for 4096
    H2 = 128         # stands in for 2048; must be 128 to feed CLNet.f1
    CLASSES = 10

    params = init_params(k_param, DROP_INPUT, H1, H2, CLASSES)
    x = jax.random.normal(k_x, (N, DROP_INPUT), jnp.float32)

    out = jax.block_until_ready(clnet_forward(x, params, mask_ratio=0.25))
    assert out.shape == (N, CLASSES)
    # log-softmax rows must (approximately) exp-sum to 1
    assert jnp.allclose(jnp.sum(jnp.exp(out), axis=1), 1.0, atol=1e-4)
    # compare against a pure-JAX f32 reference of the original module
    # (loose tolerance: kernel matmuls run bf16-in / f32-accumulate)
    ref = clnet_reference(x, params, mask_ratio=0.25)
    assert float(jnp.max(jnp.abs(out - ref))) < 0.1
    print("KERNEL_OK")
</pallas_src>

<mosaic_0001>
module attributes {stable_mosaic.version = 11 : i64} {
  func.func @_enc1_kernel(%arg0: i32, %arg1: memref<256x16xbf16, #tpu.memory_space<vmem>>, %arg2: memref<16x256xbf16, #tpu.memory_space<vmem>>, %arg3: memref<256x256xbf16, #tpu.memory_space<vmem>>, %arg4: memref<1x2x256xf32, #tpu.memory_space<vmem>>) attributes {dimension_semantics = [#tpu.dimension_semantics<parallel>], iteration_bounds = array<i64: 2>, scalar_prefetch = 0 : i64, scratch_operands = 0 : i64, tpu.core_type = #tpu.core_type<tc>, window_params = [{transform_indices = @transform_0, window_bounds = array<i64: 256, 16>}, {pipeline_mode = #tpu.pipeline_mode<synchronous>, transform_indices = @transform_1, window_bounds = array<i64: 16, 256>}, {transform_indices = @transform_2, window_bounds = array<i64: 256, 256>}, {transform_indices = @transform_3, window_bounds = array<i64: 1, 2, 256>}]} {
    %c0 = arith.constant 0 : index
    %c0_0 = arith.constant 0 : index
    %0 = vector.load %arg1[%c0, %c0_0] : memref<256x16xbf16, #tpu.memory_space<vmem>>, vector<256x16xbf16>
    %c0_1 = arith.constant 0 : index
    %c0_2 = arith.constant 0 : index
    %1 = vector.load %arg2[%c0_1, %c0_2] : memref<16x256xbf16, #tpu.memory_space<vmem>>, vector<16x256xbf16>
    %cst = arith.constant dense<0.000000e+00> : vector<256x256xf32>
    %2 = tpu.matmul %0, %1, %cst {dimension_numbers = #tpu.dot_dimension_numbers<[1], [0], [0], [1], [0, 0, 1, 1], [], []>} : vector<256x16xbf16>, vector<16x256xbf16>, vector<256x256xf32> -> vector<256x256xf32>
    %cst_3 = arith.constant dense<0.000000e+00> : vector<256xf32>
    %3 = vector.multi_reduction <add>, %2, %cst_3 [0] : vector<256x256xf32> to vector<256xf32>
    %4 = vector.shape_cast %3 : vector<256xf32> to vector<1x256xf32>
    %c0_4 = arith.constant 0 : index
    %c0_5 = arith.constant 0 : index
    %c0_6 = arith.constant 0 : index
    %5 = vector.load %arg4[%c0_4, %c0_5, %c0_6] : memref<1x2x256xf32, #tpu.memory_space<vmem>>, vector<1x1x256xf32>
    %6 = vector.shape_cast %5 : vector<1x1x256xf32> to vector<1x256xf32>
    %7 = vector.shape_cast %4 : vector<1x256xf32> to vector<1x1x256xf32>
    tpu.vector_store %arg4[%c0_4, %c0_5, %c0_6], %7 {strides = array<i32>} : memref<1x2x256xf32, #tpu.memory_space<vmem>>, vector<1x1x256xf32>,
    %8 = arith.mulf %2, %2 : vector<256x256xf32>
    %cst_7 = arith.constant dense<0.000000e+00> : vector<256xf32>
    %9 = vector.multi_reduction <add>, %8, %cst_7 [0] : vector<256x256xf32> to vector<256xf32>
    %10 = vector.shape_cast %9 : vector<256xf32> to vector<1x256xf32>
    %c0_8 = arith.constant 0 : index
    %c1 = arith.constant 1 : index
    %c0_9 = arith.constant 0 : index
    %11 = vector.load %arg4[%c0_8, %c1, %c0_9] : memref<1x2x256xf32, #tpu.memory_space<vmem>>, vector<1x1x256xf32>
    %12 = vector.shape_cast %11 : vector<1x1x256xf32> to vector<1x256xf32>
    %13 = vector.shape_cast %10 : vector<1x256xf32> to vector<1x1x256xf32>
    tpu.vector_store %arg4[%c0_8, %c1, %c0_9], %13 {strides = array<i32>} : memref<1x2x256xf32, #tpu.memory_space<vmem>>, vector<1x1x256xf32>,
    %14 = arith.truncf %2 : vector<256x256xf32> to vector<256x256xbf16>
    %c0_10 = arith.constant 0 : index
    %c0_11 = arith.constant 0 : index
    %15 = vector.load %arg3[%c0_10, %c0_11] : memref<256x256xbf16, #tpu.memory_space<vmem>>, vector<256x256xbf16>
    tpu.vector_store %arg3[%c0_10, %c0_11], %14 {strides = array<i32>} : memref<256x256xbf16, #tpu.memory_space<vmem>>, vector<256x256xbf16>,
    return
  }
  func.func @transform_0(%arg0: i32) -> (i32, i32) {
    %c0_i32 = arith.constant 0 : i32
    %c0_i32_0 = arith.constant 0 : i32
    return %arg0, %c0_i32 : i32, i32
  }
  func.func @transform_1(%arg0: i32) -> (i32, i32) {
    %c0_i32 = arith.constant 0 : i32
    %c0_i32_0 = arith.constant 0 : i32
    %c0_i32_1 = arith.constant 0 : i32
    return %c0_i32, %c0_i32_0 : i32, i32
  }
  func.func @transform_2(%arg0: i32) -> (i32, i32) {
    %c0_i32 = arith.constant 0 : i32
    %c0_i32_0 = arith.constant 0 : i32
    return %arg0, %c0_i32 : i32, i32
  }
  func.func @transform_3(%arg0: i32) -> (i32, i32, i32) {
    %c0_i32 = arith.constant 0 : i32
    %c0_i32_0 = arith.constant 0 : i32
    %c0_i32_1 = arith.constant 0 : i32
    return %arg0, %c0_i32, %c0_i32_0 : i32, i32, i32
  }
}

</mosaic_0001>

<bundles_post_ra>
// kernel: tpu_custom_call.1
= control target key start
LH: loop header
LB: loop body
LE: loop exit
PB: predicated region body
PF: predicated region fallthrough
CT: control target
= control target key end

     0   :  { %9 = vsyncpa [#allocation3], 0  ;;  %s1870_s0 = inlined_call_operand.vmem [shape: bf16[512,16], index: 0, kind: input, shape index: {}]   ;;  %s1871_s1 = inlined_call_operand.vmem [shape: bf16[16,256], index: 1, kind: input, shape index: {}]   ;;  %s1872_s2 = inlined_call_operand.hbm [shape: bf16[512,256], index: 2, kind: output, shape index: {0}]   ;;  %s1873_s3 = inlined_call_operand.hbm [shape: f32[2,2,256], index: 3, kind: output, shape index: {1}]  }
   0x1   :  { %11 = vsyncpa [#allocation3 + $0x1], 0 }
   0x2   :  { %12 = vsyncpa [#allocation5], 0 }
   0x3   :  { %14 = vsyncpa [#allocation5 + $0x1], 0  ;;  %s1467_s12 = smov 0   ;;  %s1469_s13 = smov 0  }
   0x4   :  { %s1471_s14 = smov 0   ;;  %s1473_s15 = smov 0  }
   0x5 LB: > { %s1488_s16 = sadd.s32 4294967295, %s1439_s15   ;;  %s1157_s17 = sadd.s32 4294967294, %s1439_s15   ;;  %s1439_s15 = sphi %s1473_s15, %s1879_s15   ;;  %s1435_s14 = sphi %s1471_s14, %s1878_s14   ;;  %s1431_s13 = sphi %s1469_s13, %s1877_s13   ;;  %s1427_s12 = sphi %s1467_s12, %s1876_s12  }
   0x6   : > { %s1492_s18 = sadd.s32 1, %s1439_s15   ;;  %s74_s19 = sadd.s32 1, %s1435_s14 }
   0x7   : > { %s71_s20 = ssub.s32 %s1439_s15, %s1492_s18  ;;  %p84_p0 = scmp.ne.s32.totalorder %s1435_s14, %s1431_s13 }
   0x8   : > { %p72_p1 = scmp.eq.s32.totalorder %s71_s20, 0  ;;  %p85_p2 = scmp.eq.s32.totalorder %s1488_s16, 1 }
   0x9   : > { %p90_p3 = scmp.ne.s32.totalorder %s1431_s13, %s1427_s12  ;;  %p91_p4 = scmp.eq.s32.totalorder %s1157_s17, 1 }
   0xa   : > { %s1503_s21 = scalar_select %p72_p1, %s1435_s14, %s74_s19  }
   0xb   : > { %p1505_p5 = por %p85_p2, %p84_p0  ;;  %p1509_p6 = por %p91_p4, %p90_p3 }
   0xc   : > { %p1160_p7 = scmp.ge.s32.totalorder %s1439_s15, 1  ;;  %p147_p8 = scmp.lt.s32.totalorder %s1439_s15, 3 }
   0xe   : > { %p148_p9 = pnand %p1160_p7, %p147_p8 }
   0xf   : > { %v1326_v0 = vld [vmem:[%s1871_s1 + $0x4] ss:$8 sps:$4 sm:$0xff] (!%p148_p9)   ;;  %s1163_s26 = sshll.u32 (!%p148_p9), %s1488_s16, 5  ;;  %v1328_v1 = vld [vmem:[%s1871_s1] ss:$8 sps:$4 sm:$0xff] (!%p148_p9)   ;;  %v1441_v2 = vmov (!%p148_p9), 0  }
  0x10   : > { %151 = sbr.rel (%p148_p9) target bundleno = 378 (0x17a), region = 28  ;;  %389 = vmatprep.mubr.bf16.mxu0 (!%p148_p9), %v1441_v2  ;;  %p177_p10 = scmp.lt.s32.totalorder (!%p148_p9), %s1163_s26, 63  ;;  %469 = vmatprep.mubr.bf16.mxu1 (!%p148_p9), %v1441_v2  ;;  %vm308_vm0 = vcmask (!%p148_p9), 130048  }
  0x11   : > { %357 = vmatprep.subr.bf16.mxu0 (!%p148_p9), %v1326_v0  ;;  %1276 = vmatprep.subr.bf16.mxu1 (!%p148_p9), %v1326_v0  ;;  %s1560_s6 = sand.u32 (!%p148_p9), 1, %s1431_s13   ;;  %s1274_s9 = sshll.u32 (!%p148_p9), %s1488_s16, 12 }
  0x12   : > { %358 = vmatpush1.bf16.msra.mxu0 (!%p148_p9), %v1328_v1  ;;  %1277 = vmatpush1.bf16.msra.mxu1 (!%p148_p9), %v1328_v1  ;;  %s1161_s7 = sshll.u32 (!%p148_p9), %s1560_s6, 8  ;;  %s1703_s19 = scalar_lea.hbm (!%p148_p9), %s1872_s2, %s1274_s9 }
  0x13   : > { %s1563_s8 = scalar_lea.vmem (!%p148_p9), [#allocation2], %s1161_s7  ;;  %s1030_s20 = scalar_lea.sflag (!%p148_p9), [#allocation3], %s1560_s6 }
  0x14   : > { %s1049_s10 = sshll.u32 (!%p148_p9), %s1563_s8, 4  ;;  %s1442_s25 = smov (!%p148_p9), [#allocation2]   ;;  %s1705_s10 = int_to_ptr.vmem [resolvable:$true] %s1049_s10 }
  0x15   : > { %s1345_s24 = scalar_lea.vmem (!%p148_p9), %s1705_s10, 4096 }
  0x16   : > { %p1346_p11 = scmp.ne.s32.totalorder (!%p148_p9), %s1705_s10, %s1345_s24 }
  0x17   : > { %s1881_s26 = smov (!%p177_p10, %s1163_s26), 63 }
  0x18   : > { %s1164_s29 = sshll.u32 %s1881_s26, 2  ;;  %p1347_p12 = pnand %p1346_p11, %p1505_p5 }
  0x19   : > { %s1525_s5 = scalar_lea.vmem %s1870_s0, %s1164_s29  ;;  %s1349_s26 = sshll.u32 %s1442_s25, 4  ;;  %s1350_s26 = int_to_ptr.vmem [resolvable:$false] %s1349_s26 }
  0x1a   : > { %v1329_v3 = vld [vmem:[%s1525_s5] sm:$0xff]   ;;  %v1330_v5 = vld [vmem:[%s1525_s5 + $0x8] sm:$0xff]   ;;  %v1331_v7 = vld [vmem:[%s1525_s5 + $0x10] sm:$0xff]   ;;  %p1348_p13 = pneg %p1347_p12  ;;  %s1351_s27 = scalar_lea.vmem %s1350_s26, 8192 }
  0x1b   : > { %1183 = vmatmul.mubr.msk.bf16.vlgmr.msra.gmra.mrb[0].mxu0 %vm308_vm0, %v1329_v3  ;;  %v1333_v4 = vld [vmem:[%s1525_s5 + $0x40] sm:$0xff]   ;;  %v1335_v6 = vld [vmem:[%s1525_s5 + $0x48] sm:$0xff]   ;;  %v1337_v8 = vld [vmem:[%s1525_s5 + $0x50] sm:$0xff]   ;;  %p1352_p0 = scmp.lt.s32.totalorder %s1705_s10, %s1350_s26  ;;  %p1353_p1 = scmp.lt.s32.totalorder %s1351_s27, %s1345_s24 }
  0x1c   : > { %399 = vmatprep.mubr.bf16.mxu0 %v1441_v2  ;;  %1191 = vmatmul.mubr.msk.bf16.vlgmr.msra.gmra.mrb[0].mxu1 %vm308_vm0, %v1333_v4  ;;  %v1332_v9 = vld [vmem:[%s1525_s5 + $0x18] sm:$0xff]   ;;  %v1334_v11 = vld [vmem:[%s1525_s5 + $0x20] sm:$0xff]   ;;  %v1336_v13 = vld [vmem:[%s1525_s5 + $0x28] sm:$0xff]  }
  0x1d   : > { %479 = vmatprep.mubr.bf16.mxu1 %v1441_v2  ;;  %v1339_v10 = vld [vmem:[%s1525_s5 + $0x58] sm:$0xff]   ;;  %v1341_v12 = vld [vmem:[%s1525_s5 + $0x60] sm:$0xff]   ;;  %v1342_v14 = vld [vmem:[%s1525_s5 + $0x68] sm:$0xff]   ;;  %p1354_p2 = por %p1353_p1, %p1352_p0 }
  0x1e   : > { %v1338_v15 = vld [vmem:[%s1525_s5 + $0x30] sm:$0xff]   ;;  %v1340_v17 = vld [vmem:[%s1525_s5 + $0x38] sm:$0xff]  }
  0x1f   : > { %v1343_v16 = vld [vmem:[%s1525_s5 + $0x70] sm:$0xff]   ;;  %v1344_v18 = vld [vmem:[%s1525_s5 + $0x78] sm:$0xff]   ;;  %p1355_p3 = pnand %p1354_p2, %p1348_p13 }
  0x23   : > { %1184 = vmatmul.mubr.msk.bf16.gmra.mrb[4].mxu0 %vm308_vm0, %v1330_v5 }
  0x24   : > { %409 = vmatprep.mubr.bf16.mxu0 %v1441_v2  ;;  %1192 = vmatmul.mubr.msk.bf16.gmra.mrb[4].mxu1 %vm308_vm0, %v1335_v6 }
  0x25   : > { %489 = vmatprep.mubr.bf16.mxu1 %v1441_v2 }
  0x2b   : > { %1185 = vmatmul.mubr.msk.bf16.gmra.mrb[8].mxu0 %vm308_vm0, %v1331_v7 }
  0x2c   : > { %419 = vmatprep.mubr.bf16.mxu0 %v1441_v2  ;;  %1193 = vmatmul.mubr.msk.bf16.gmra.mrb[8].mxu1 %vm308_vm0, %v1337_v8 }
  0x2d   : > { %499 = vmatprep.mubr.bf16.mxu1 %v1441_v2 }
  0x33   : > { %1186 = vmatmul.mubr.msk.bf16.gmra.mrb[12].mxu0 %vm308_vm0, %v1332_v9 }
  0x34   : > { %429 = vmatprep.mubr.bf16.mxu0 %v1441_v2  ;;  %1194 = vmatmul.mubr.msk.bf16.gmra.mrb[12].mxu1 %vm308_vm0, %v1339_v10 }
  0x35   : > { %509 = vmatprep.mubr.bf16.mxu1 %v1441_v2 }
  0x3b   : > { %1187 = vmatmul.mubr.msk.bf16.gmra.mrb[16].mxu0 %vm308_vm0, %v1334_v11 }
  0x3c   : > { %439 = vmatprep.mubr.bf16.mxu0 %v1441_v2  ;;  %1195 = vmatmul.mubr.msk.bf16.gmra.mrb[16].mxu1 %vm308_vm0, %v1341_v12 }
  0x3d   : > { %519 = vmatprep.mubr.bf16.mxu1 %v1441_v2 }
  0x43   : > { %1188 = vmatmul.mubr.msk.bf16.gmra.mrb[20].mxu0 %vm308_vm0, %v1336_v13 }
  0x44   : > { %449 = vmatprep.mubr.bf16.mxu0 %v1441_v2  ;;  %1196 = vmatmul.mubr.msk.bf16.gmra.mrb[20].mxu1 %vm308_vm0, %v1342_v14 }
  0x45   : > { %529 = vmatprep.mubr.bf16.mxu1 %v1441_v2 }
  0x4b   : > { %1189 = vmatmul.mubr.msk.bf16.gmra.mrb[24].mxu0 %vm308_vm0, %v1338_v15 }
  0x4c   : > { %459 = vmatprep.mubr.bf16.mxu0 %v1441_v2  ;;  %1197 = vmatmul.mubr.msk.bf16.gmra.mrb[24].mxu1 %vm308_vm0, %v1343_v16 }
  0x4d   : > { %539 = vmatprep.mubr.bf16.mxu1 %v1441_v2 }
  0x53   : > { %1190 = vmatmul.mubr.msk.bf16.gmra.mrb[28].mxu0 %vm308_vm0, %v1340_v17 }
  0x54   : > { %1198 = vmatmul.mubr.msk.bf16.gmra.mrb[28].mxu1 %vm308_vm0, %v1344_v18 }
  0xee   : > { %v391_v19 = vpop.f32.mrb[0].mxu0 }
  0xef   : > { %v393_v20 = vpop.f32.mrb[1].mxu0  ;;  %v647_v23 = vmul.f32 %v391_v19, %v391_v19  ;;  %v1566_v31 = vpop.f32.mrb[0].mxu1 }
  0xf0   : > { %v1241_v21 = vpack.c.bf16 %v393_v20, %v391_v19  ;;  %v395_v22 = vpop.f32.mrb[2].mxu0  ;;  %v648_v27 = vmul.f32 %v393_v20, %v393_v20  ;;  %v1568_v33 = vpop.f32.mrb[1].mxu1 }
  0xf1   : > { %v550_v24 = vadd.f32 %v395_v22, %v391_v19  ;;  %v649_v25 = vmul.f32 %v395_v22, %v395_v22  ;;  %v397_v26 = vpop.f32.mrb[3].mxu0  ;;  %v1257_v35 = vpack.c.bf16 %v1568_v33, %v1566_v31  ;;  %v1573_v36 = vpop.f32.mrb[2].mxu1 }
  0xf2   : > { %997 = vst [vmem:[%s1563_s8] sm:$0xff] %v1241_v21  ;;  %v587_v28 = vadd.f32 %v397_v26, %v393_v20  ;;  %v650_v29 = vmul.f32 %v397_v26, %v397_v26  ;;  %v1242_v30 = vpack.c.bf16 %v397_v26, %v395_v22  ;;  %v1575_v37 = vpop.f32.mrb[3].mxu1 }
  0xf3   : > { %v711_v32 = vadd.f32 %v649_v25, %v647_v23  ;;  %1013 = vst [vmem:[%s1563_s8 + $0x80] sm:$0xff] %v1257_v35  ;;  %v1258_v39 = vpack.c.bf16 %v1575_v37, %v1573_v36 }
  0xf4   : > { %v748_v34 = vadd.f32 %v650_v29, %v648_v27  ;;  %998 = vst [vmem:[%s1563_s8 + $0x8] sm:$0xff] %v1242_v30 }
  0xf5   : > { %1014 = vst [vmem:[%s1563_s8 + $0x88] sm:$0xff] %v1258_v39 }
  0xf6   : > { %v401_v38 = vpop.f32.mrb[4].mxu0 }
  0xf7   : > { %v551_v40 = vadd.f32 %v550_v24, %v401_v38  ;;  %v651_v41 = vmul.f32 %v401_v38, %v401_v38  ;;  %v403_v42 = vpop.f32.mrb[5].mxu0  ;;  %v1582_v55 = vpop.f32.mrb[4].mxu1 }
  0xf8   : > { %v588_v43 = vadd.f32 %v587_v28, %v403_v42  ;;  %v652_v44 = vmul.f32 %v403_v42, %v403_v42  ;;  %v1243_v45 = vpack.c.bf16 %v403_v42, %v401_v38  ;;  %v405_v46 = vpop.f32.mrb[6].mxu0  ;;  %v1584_v57 = vpop.f32.mrb[5].mxu1 }
  0xf9   : > { %v712_v47 = vadd.f32 %v711_v32, %v651_v41  ;;  %v552_v48 = vadd.f32 %v551_v40, %v405_v46  ;;  %v653_v49 = vmul.f32 %v405_v46, %v405_v46  ;;  %v407_v50 = vpop.f32.mrb[7].mxu0  ;;  %v1259_v59 = vpack.c.bf16 %v1584_v57, %v1582_v55  ;;  %v1589_v60 = vpop.f32.mrb[6].mxu1 }
  0xfa   : > { %v749_v51 = vadd.f32 %v748_v34, %v652_v44  ;;  %999 = vst [vmem:[%s1563_s8 + $0x10] sm:$0xff] %v1243_v45  ;;  %v589_v52 = vadd.f32 %v588_v43, %v407_v50  ;;  %v654_v53 = vmul.f32 %v407_v50, %v407_v50  ;;  %v1244_v54 = vpack.c.bf16 %v407_v50, %v405_v46  ;;  %v1591_v61 = vpop.f32.mrb[7].mxu1 }
  0xfb   : > { %v713_v56 = vadd.f32 %v712_v47, %v653_v49  ;;  %1015 = vst [vmem:[%s1563_s8 + $0x90] sm:$0xff] %v1259_v59  ;;  %v1260_v63 = vpack.c.bf16 %v1591_v61, %v1589_v60 }
  0xfc   : > { %v750_v58 = vadd.f32 %v749_v51, %v654_v53  ;;  %1000 = vst [vmem:[%s1563_s8 + $0x18] sm:$0xff] %v1244_v54 }
  0xfd   : > { %1016 = vst [vmem:[%s1563_s8 + $0x98] sm:$0xff] %v1260_v63 }
  0xfe   : > { %v411_v62 = vpop.f32.mrb[8].mxu0 }
  0xff   : > { %v553_v0 = vadd.f32 %v552_v48, %v411_v62  ;;  %v655_v1 = vmul.f32 %v411_v62, %v411_v62  ;;  %v413_v2 = vpop.f32.mrb[9].mxu0  ;;  %v1598_v15 = vpop.f32.mrb[8].mxu1 }
 0x100   : > { %v590_v3 = vadd.f32 %v589_v52, %v413_v2  ;;  %v656_v4 = vmul.f32 %v413_v2, %v413_v2  ;;  %v1245_v5 = vpack.c.bf16 %v413_v2, %v411_v62  ;;  %v415_v6 = vpop.f32.mrb[10].mxu0  ;;  %v1600_v17 = vpop.f32.mrb[9].mxu1 }
 0x101   : > { %v714_v7 = vadd.f32 %v713_v56, %v655_v1  ;;  %v554_v8 = vadd.f32 %v553_v0, %v415_v6  ;;  %v657_v9 = vmul.f32 %v415_v6, %v415_v6  ;;  %v417_v10 = vpop.f32.mrb[11].mxu0  ;;  %v1261_v19 = vpack.c.bf16 %v1600_v17, %v1598_v15  ;;  %v1605_v20 = vpop.f32.mrb[10].mxu1 }
 0x102   : > { %v751_v11 = vadd.f32 %v750_v58, %v656_v4  ;;  %1001 = vst [vmem:[%s1563_s8 + $0x20] sm:$0xff] %v1245_v5  ;;  %v591_v12 = vadd.f32 %v590_v3, %v417_v10  ;;  %v658_v13 = vmul.f32 %v417_v10, %v417_v10  ;;  %v1246_v14 = vpack.c.bf16 %v417_v10, %v415_v6  ;;  %v1607_v21 = vpop.f32.mrb[11].mxu1 }
 0x103   : > { %v715_v16 = vadd.f32 %v714_v7, %v657_v9  ;;  %1017 = vst [vmem:[%s1563_s8 + $0xa0] sm:$0xff] %v1261_v19  ;;  %v1262_v23 = vpack.c.bf16 %v1607_v21, %v1605_v20 }
 0x104   : > { %v752_v18 = vadd.f32 %v751_v11, %v658_v13  ;;  %1002 = vst [vmem:[%s1563_s8 + $0x28] sm:$0xff] %v1246_v14 }
 0x105   : > { %1018 = vst [vmem:[%s1563_s8 + $0xa8] sm:$0xff] %v1262_v23 }
 0x106   : > { %v421_v22 = vpop.f32.mrb[12].mxu0 }
 0x107   : > { %v555_v24 = vadd.f32 %v554_v8, %v421_v22  ;;  %v659_v25 = vmul.f32 %v421_v22, %v421_v22  ;;  %v423_v26 = vpop.f32.mrb[13].mxu0  ;;  %v1614_v43 = vpop.f32.mrb[12].mxu1 }
 0x108   : > { %v592_v27 = vadd.f32 %v591_v12, %v423_v26  ;;  %v660_v28 = vmul.f32 %v423_v26, %v423_v26  ;;  %v1247_v29 = vpack.c.bf16 %v423_v26, %v421_v22  ;;  %v425_v30 = vpop.f32.mrb[14].mxu0  ;;  %v1616_v45 = vpop.f32.mrb[13].mxu1 }
 0x109   : > { %v716_v32 = vadd.f32 %v715_v16, %v659_v25  ;;  %v556_v34 = vadd.f32 %v555_v24, %v425_v30  ;;  %v661_v35 = vmul.f32 %v425_v30, %v425_v30  ;;  %v427_v38 = vpop.f32.mrb[15].mxu0  ;;  %v1263_v47 = vpack.c.bf16 %v1616_v45, %v1614_v43  ;;  %v1621_v48 = vpop.f32.mrb[14].mxu1 }
 0x10a   : > { %v753_v39 = vadd.f32 %v752_v18, %v660_v28  ;;  %1003 = vst [vmem:[%s1563_s8 + $0x30] sm:$0xff] %v1247_v29  ;;  %v593_v40 = vadd.f32 %v592_v27, %v427_v38  ;;  %v662_v41 = vmul.f32 %v427_v38, %v427_v38  ;;  %v1248_v42 = vpack.c.bf16 %v427_v38, %v425_v30  ;;  %v1623_v49 = vpop.f32.mrb[15].mxu1 }
 0x10b   : > { %v717_v44 = vadd.f32 %v716_v32, %v661_v35  ;;  %1019 = vst [vmem:[%s1563_s8 + $0xb0] sm:$0xff] %v1263_v47  ;;  %v1264_v51 = vpack.c.bf16 %v1623_v49, %v1621_v48 }
 0x10c   : > { %v754_v46 = vadd.f32 %v753_v39, %v662_v41  ;;  %1004 = vst [vmem:[%s1563_s8 + $0x38] sm:$0xff] %v1248_v42 }
 0x10d   : > { %1020 = vst [vmem:[%s1563_s8 + $0xb8] sm:$0xff] %v1264_v51 }
 0x10e   : > { %v431_v50 = vpop.f32.mrb[16].mxu0 }
 0x10f   : > { %v557_v52 = vadd.f32 %v556_v34, %v431_v50  ;;  %v663_v53 = vmul.f32 %v431_v50, %v431_v50  ;;  %v433_v54 = vpop.f32.mrb[17].mxu0  ;;  %v1630_v7 = vpop.f32.mrb[16].mxu1 }
 0x110   : > { %v594_v56 = vadd.f32 %v593_v40, %v433_v54  ;;  %v664_v58 = vmul.f32 %v433_v54, %v433_v54  ;;  %v1249_v59 = vpack.c.bf16 %v433_v54, %v431_v50  ;;  %v435_v62 = vpop.f32.mrb[18].mxu0  ;;  %v1632_v9 = vpop.f32.mrb[17].mxu1 }
 0x111   : > { %v718_v63 = vadd.f32 %v717_v44, %v663_v53  ;;  %v558_v0 = vadd.f32 %v557_v52, %v435_v62  ;;  %v665_v1 = vmul.f32 %v435_v62, %v435_v62  ;;  %v437_v2 = vpop.f32.mrb[19].mxu0  ;;  %v1265_v11 = vpack.c.bf16 %v1632_v9, %v1630_v7  ;;  %v1637_v12 = vpop.f32.mrb[18].mxu1 }
 0x112   : > { %v755_v3 = vadd.f32 %v754_v46, %v664_v58  ;;  %1005 = vst [vmem:[%s1563_s8 + $0x40] sm:$0xff] %v1249_v59  ;;  %v595_v4 = vadd.f32 %v594_v56, %v437_v2  ;;  %v666_v5 = vmul.f32 %v437_v2, %v437_v2  ;;  %v1250_v6 = vpack.c.bf16 %v437_v2, %v435_v62  ;;  %v1639_v13 = vpop.f32.mrb[19].mxu1 }
 0x113   : > { %v719_v8 = vadd.f32 %v718_v63, %v665_v1  ;;  %1021 = vst [vmem:[%s1563_s8 + $0xc0] sm:$0xff] %v1265_v11  ;;  %v1266_v16 = vpack.c.bf16 %v1639_v13, %v1637_v12 }
 0x114   : > { %v756_v10 = vadd.f32 %v755_v3, %v666_v5  ;;  %1006 = vst [vmem:[%s1563_s8 + $0x48] sm:$0xff] %v1250_v6 }
 0x115   : > { %1022 = vst [vmem:[%s1563_s8 + $0xc8] sm:$0xff] %v1266_v16 }
 0x116   : > { %v441_v14 = vpop.f32.mrb[20].mxu0 }
 0x117   : > { %v559_v18 = vadd.f32 %v558_v0, %v441_v14  ;;  %v667_v19 = vmul.f32 %v441_v14, %v441_v14  ;;  %v443_v22 = vpop.f32.mrb[21].mxu0  ;;  %v1646_v39 = vpop.f32.mrb[20].mxu1 }
 0x118   : > { %v596_v23 = vadd.f32 %v595_v4, %v443_v22  ;;  %v668_v24 = vmul.f32 %v443_v22, %v443_v22  ;;  %v1251_v25 = vpack.c.bf16 %v443_v22, %v441_v14  ;;  %v445_v26 = vpop.f32.mrb[22].mxu0  ;;  %v1648_v41 = vpop.f32.mrb[21].mxu1 }
 0x119   : > { %v720_v27 = vadd.f32 %v719_v8, %v667_v19  ;;  %v560_v28 = vadd.f32 %v559_v18, %v445_v26  ;;  %v669_v29 = vmul.f32 %v445_v26, %v445_v26  ;;  %v447_v30 = vpop.f32.mrb[23].mxu0  ;;  %v1267_v44 = vpack.c.bf16 %v1648_v41, %v1646_v39  ;;  %v1653_v46 = vpop.f32.mrb[22].mxu1 }
 0x11a   : > { %v757_v32 = vadd.f32 %v756_v10, %v668_v24  ;;  %1007 = vst [vmem:[%s1563_s8 + $0x50] sm:$0xff] %v1251_v25  ;;  %v597_v34 = vadd.f32 %v596_v23, %v447_v30  ;;  %v670_v35 = vmul.f32 %v447_v30, %v447_v30  ;;  %v1252_v38 = vpack.c.bf16 %v447_v30, %v445_v26  ;;  %v1655_v47 = vpop.f32.mrb[23].mxu1 }
 0x11b   : > { %v721_v40 = vadd.f32 %v720_v27, %v669_v29  ;;  %1023 = vst [vmem:[%s1563_s8 + $0xd0] sm:$0xff] %v1267_v44  ;;  %v1268_v51 = vpack.c.bf16 %v1655_v47, %v1653_v46 }
 0x11c   : > { %v758_v42 = vadd.f32 %v757_v32, %v670_v35  ;;  %1008 = vst [vmem:[%s1563_s8 + $0x58] sm:$0xff] %v1252_v38 }
 0x11d   : > { %1024 = vst [vmem:[%s1563_s8 + $0xd8] sm:$0xff] %v1268_v51 }
 0x11e   : > { %v451_v50 = vpop.f32.mrb[24].mxu0 }
 0x11f   : > { %v561_v52 = vadd.f32 %v560_v28, %v451_v50  ;;  %v671_v53 = vmul.f32 %v451_v50, %v451_v50  ;;  %v453_v54 = vpop.f32.mrb[25].mxu0  ;;  %v1662_v8 = vpop.f32.mrb[24].mxu1 }
 0x120   : > { %v598_v56 = vadd.f32 %v597_v34, %v453_v54  ;;  %v672_v58 = vmul.f32 %v453_v54, %v453_v54  ;;  %v1253_v59 = vpack.c.bf16 %v453_v54, %v451_v50  ;;  %v455_v62 = vpop.f32.mrb[26].mxu0  ;;  %v1664_v11 = vpop.f32.mrb[25].mxu1 }
 0x121   : > { %v722_v63 = vadd.f32 %v721_v40, %v671_v53  ;;  %v562_v0 = vadd.f32 %v561_v52, %v455_v62  ;;  %v673_v1 = vmul.f32 %v455_v62, %v455_v62  ;;  %v457_v2 = vpop.f32.mrb[27].mxu0  ;;  %v1269_v16 = vpack.c.bf16 %v1664_v11, %v1662_v8  ;;  %v1669_v18 = vpop.f32.mrb[26].mxu1 }
 0x122   : > { %v759_v3 = vadd.f32 %v758_v42, %v672_v58  ;;  %1009 = vst [vmem:[%s1563_s8 + $0x60] sm:$0xff] %v1253_v59  ;;  %v599_v4 = vadd.f32 %v598_v56, %v457_v2  ;;  %v674_v5 = vmul.f32 %v457_v2, %v457_v2  ;;  %v1254_v6 = vpack.c.bf16 %v457_v2, %v455_v62  ;;  %v1671_v19 = vpop.f32.mrb[27].mxu1 }
 0x123   : > { %v723_v10 = vadd.f32 %v722_v63, %v673_v1  ;;  %1025 = vst [vmem:[%s1563_s8 + $0xe0] sm:$0xff] %v1269_v16  ;;  %v1270_v23 = vpack.c.bf16 %v1671_v19, %v1669_v18  ;;  %v679_v52 = vmul.f32 %v1566_v31, %v1566_v31  ;;  %v680_v58 = vmul.f32 %v1568_v33, %v1568_v33 }
 0x124   : > { %v760_v14 = vadd.f32 %v759_v3, %v674_v5  ;;  %1010 = vst [vmem:[%s1563_s8 + $0x68] sm:$0xff] %v1254_v6  ;;  %v681_v1 = vmul.f32 %v1573_v36, %v1573_v36  ;;  %v683_v6 = vmul.f32 %v1582_v55, %v1582_v55  ;;  %v684_v16 = vmul.f32 %v1584_v57, %v1584_v57 }
 0x125   : > { %1026 = vst [vmem:[%s1563_s8 + $0xe8] sm:$0xff] %v1270_v23  ;;  %v685_v23 = vmul.f32 %v1589_v60, %v1589_v60 }
 0x126   : > { %v461_v22 = vpop.f32.mrb[28].mxu0 }
 0x127   : > { %v563_v24 = vadd.f32 %v562_v0, %v461_v22  ;;  %v675_v25 = vmul.f32 %v461_v22, %v461_v22  ;;  %v463_v26 = vpop.f32.mrb[29].mxu0  ;;  %v1678_v51 = vpop.f32.mrb[28].mxu1 }
 0x128   : > { %v600_v27 = vadd.f32 %v599_v4, %v463_v26  ;;  %v676_v28 = vmul.f32 %v463_v26, %v463_v26  ;;  %v1255_v29 = vpack.c.bf16 %v463_v26, %v461_v22  ;;  %v465_v30 = vpop.f32.mrb[30].mxu0  ;;  %v1685_v56 = vpop.f32.mrb[29].mxu1 }
 0x129   : > { %v724_v32 = vadd.f32 %v723_v10, %v675_v25  ;;  %v564_v34 = vadd.f32 %v563_v24, %v465_v30  ;;  %v677_v35 = vmul.f32 %v465_v30, %v465_v30  ;;  %v467_v38 = vpop.f32.mrb[31].mxu0  ;;  %v1271_v63 = vpack.c.bf16 %v1685_v56, %v1678_v51  ;;  %v1693_v0 = vpop.f32.mrb[30].mxu1 }
 0x12a   : > { %v761_v40 = vadd.f32 %v760_v14, %v676_v28  ;;  %1011 = vst [vmem:[%s1563_s8 + $0x70] sm:$0xff] %v1255_v29  ;;  %v601_v42 = vadd.f32 %v600_v27, %v467_v38  ;;  %v678_v44 = vmul.f32 %v467_v38, %v467_v38  ;;  %v1256_v50 = vpack.c.bf16 %v467_v38, %v465_v30  ;;  %v1698_v3 = vpop.f32.mrb[31].mxu1 }
 0x12b   : > { %v565_v53 = vadd.f32 %v564_v34, %v1566_v31  ;;  %v725_v54 = vadd.f32 %v724_v32, %v677_v35  ;;  %1027 = vst [vmem:[%s1563_s8 + $0xf0] sm:$0xff] %v1271_v63  ;;  %v1272_v5 = vpack.c.bf16 %v1698_v3, %v1693_v0 }
 0x12c   : > { %v602_v59 = vadd.f32 %v601_v42, %v1568_v33  ;;  %v762_v62 = vadd.f32 %v761_v40, %v678_v44  ;;  %1012 = vst [vmem:[%s1563_s8 + $0x78] sm:$0xff] %v1256_v50  ;;  %v682_v33 = vmul.f32 %v1575_v37, %v1575_v37 }
 0x12d   : > { %v566_v31 = vadd.f32 %v565_v53, %v1573_v36  ;;  %v726_v2 = vadd.f32 %v725_v54, %v679_v52  ;;  %1028 = vst [vmem:[%s1563_s8 + $0xf8] sm:$0xff] %v1272_v5 }
 0x12e   : > { %v603_v4 = vadd.f32 %v602_v59, %v1575_v37  ;;  %v763_v36 = vadd.f32 %v762_v62, %v680_v58 }
 0x12f   : > { %v567_v10 = vadd.f32 %v566_v31, %v1582_v55  ;;  %v727_v14 = vadd.f32 %v726_v2, %v681_v1 }
 0x130   : > { %v604_v22 = vadd.f32 %v603_v4, %v1584_v57  ;;  %v764_v37 = vadd.f32 %v763_v36, %v682_v33 }
 0x131   : > { %v568_v24 = vadd.f32 %v567_v10, %v1589_v60  ;;  %v728_v25 = vadd.f32 %v727_v14, %v683_v6 }
 0x132   : > { %1358 = shalt.err (!%p1355_p3)
}
 0x133   : > { %s1359_s28 = scalar_lea.hbm %s1703_s19, 4096  ;;  %s1363_s4 = scalar_lea.hbm %s1872_s2, 8192 }
 0x134   : > { %p1360_p4 = scmp.ne.s32.totalorder %s1703_s19, %s1359_s28  ;;  %p1364_p9 = scmp.lt.u32.totalorder %s1703_s19, %s1872_s2 }
 0x135   : > { %p1365_p10 = scmp.lt.u32.totalorder %s1363_s4, %s1359_s28  ;;  %p1367_p12 = scmp.lt.u32.totalorder %s1359_s28, %s1703_s19 }
 0x136   : > { %p1361_p7 = pnand %p1360_p4, %p1505_p5 }
 0x137   : > { %p1366_p11 = por %p1365_p10, %p1364_p9 }
 0x138   : > { %p1362_p8 = pneg %p1361_p7 }
 0x139   : > { %p1368_p13 = por %p1367_p12, %p1366_p11 }
 0x13b   : > { %p1369_p0 = pnand %p1368_p13, %p1362_p8 }
 0x13d   : > { %1372 = shalt.err (!%p1369_p0)
}
 0x13e   : > { %s1443_s8 = smov 128   ;;  %s1444_s9 = smov 8   ;;  %v686_v55 = vmul.f32 %v1591_v61, %v1591_v61  ;;  %v605_v57 = vadd.f32 %v604_v22, %v1591_v61  ;;  %v765_v60 = vadd.f32 %v764_v37, %v684_v16  ;;  %v687_v26 = vmul.f32 %v1598_v15, %v1598_v15 }
 0x13f   : > { %1278 = dma.vmem_to_hbm [thread:$0]  (%p1505_p5), %s1705_s10, 4096, %s1703_s19, %s1030_s20, %s1443_s8, %s1443_s8, %s1444_s9   ;;  %v729_v27 = vadd.f32 %v728_v25, %v685_v23  ;;  %v569_v28 = vadd.f32 %v568_v24, %v1598_v15  ;;  %v688_v29 = vmul.f32 %v1600_v17, %v1600_v17  ;;  %v689_v34 = vmul.f32 %v1605_v20, %v1605_v20 }
 0x140   : > { %v766_v30 = vadd.f32 %v765_v60, %v686_v55  ;;  %v606_v32 = vadd.f32 %v605_v57, %v1600_v17  ;;  %v690_v61 = vmul.f32 %v1607_v21, %v1607_v21  ;;  %v691_v15 = vmul.f32 %v1614_v43, %v1614_v43  ;;  %s1162_s10 = sshll.u32 %s1560_s6, 2  ;;  %s1275_s11 = sshll.u32 %s1488_s16, 6 }
 0x141   : > { %v570_v35 = vadd.f32 %v569_v28, %v1605_v20  ;;  %v730_v38 = vadd.f32 %v729_v27, %v687_v26  ;;  %v692_v17 = vmul.f32 %v1616_v45, %v1616_v45  ;;  %v693_v20 = vmul.f32 %v1621_v48, %v1621_v48  ;;  %s175_s17 = scalar_lea.vmem [#allocation4], %s1162_s10  ;;  %s1827_s25 = scalar_lea.hbm %s1873_s3, %s1275_s11 }
 0x142   : > { %v607_v40 = vadd.f32 %v606_v32, %v1607_v21  ;;  %v767_v42 = vadd.f32 %v766_v30, %v688_v29  ;;  %v694_v21 = vmul.f32 %v1623_v49, %v1623_v49  ;;  %v695_v63 = vmul.f32 %v1630_v7, %v1630_v7  ;;  %s1066_s19 = sshll.u32 %s175_s17, 4  ;;  %s1035_s26 = scalar_lea.sflag [#allocation5], %s1560_s6  ;;  %s1829_s19 = int_to_ptr.vmem [resolvable:$true] %s1066_s19 }
 0x143   : > { %v571_v44 = vadd.f32 %v570_v35, %v1614_v43  ;;  %v731_v50 = vadd.f32 %v730_v38, %v689_v34  ;;  %v696_v31 = vmul.f32 %v1632_v9, %v1632_v9  ;;  %v697_v4 = vmul.f32 %v1637_v12, %v1637_v12  ;;  %s1373_s27 = scalar_lea.vmem %s1829_s19, 64  ;;  %s1446_s16 = smov [#allocation4]  }
 0x144   : > { %v608_v52 = vadd.f32 %v607_v40, %v1616_v45  ;;  %v768_v53 = vadd.f32 %v767_v42, %v690_v61  ;;  %v698_v5 = vmul.f32 %v1639_v13, %v1639_v13  ;;  %v699_v10 = vmul.f32 %v1646_v39, %v1646_v39  ;;  %p1374_p1 = scmp.ne.s32.totalorder %s1829_s19, %s1373_s27  ;;  %s1377_s28 = sshll.u32 %s1446_s16, 4  ;;  %s1378_s28 = int_to_ptr.vmem [resolvable:$false] %s1377_s28 }
 0x145   : > { %v572_v54 = vadd.f32 %v571_v44, %v1621_v48  ;;  %v732_v58 = vadd.f32 %v731_v50, %v691_v15  ;;  %v700_v16 = vmul.f32 %v1648_v41, %v1648_v41  ;;  %v701_v37 = vmul.f32 %v1653_v46, %v1653_v46  ;;  %s1379_s29 = scalar_lea.vmem %s1378_s28, 128  ;;  %p1380_p4 = scmp.lt.s32.totalorder %s1829_s19, %s1378_s28 }
 0x146   : > { %v609_v59 = vadd.f32 %v608_v52, %v1623_v49  ;;  %v769_v62 = vadd.f32 %v768_v53, %v692_v17  ;;  %v702_v24 = vmul.f32 %v1655_v47, %v1655_v47  ;;  %v703_v55 = vmul.f32 %v1662_v8, %v1662_v8  ;;  %p1375_p2 = pnand %p1374_p1, %p1505_p5  ;;  %p1381_p7 = scmp.lt.s32.totalorder %s1379_s29, %s1373_s27 }
 0x147   : > { %v573_v43 = vadd.f32 %v572_v54, %v1630_v7  ;;  %v733_v1 = vadd.f32 %v732_v58, %v693_v20  ;;  %v704_v60 = vmul.f32 %v1664_v11, %v1664_v11  ;;  %v705_v27 = vmul.f32 %v1669_v18, %v1669_v18 }
 0x148   : > { %v610_v45 = vadd.f32 %v609_v59, %v1632_v9  ;;  %v770_v2 = vadd.f32 %v769_v62, %v694_v21  ;;  %v708_v30 = vmul.f32 %v1685_v56, %v1685_v56  ;;  %v709_v61 = vmul.f32 %v1693_v0, %v1693_v0  ;;  %p1376_p3 = pneg %p1375_p2  ;;  %p1382_p8 = por %p1381_p7, %p1380_p4 }
 0x149   : > { %v734_v48 = vadd.f32 %v733_v1, %v695_v63  ;;  %v574_v33 = vadd.f32 %v573_v43, %v1637_v12  ;;  %v1445_v20 = vmov 1966171168   ;;  %v630_v58 = vlaneseq }
 0x14a   : > { %v771_v49 = vadd.f32 %v770_v2, %v696_v31  ;;  %v611_v36 = vadd.f32 %v610_v45, %v1639_v13  ;;  %v628_v54 = vunpack.c.l.s4 %v1445_v20  ;;  %p1383_p9 = pnand %p1382_p8, %p1376_p3 }
 0x14b   : > { %v735_v7 = vadd.f32 %v734_v48, %v697_v4  ;;  %v575_v6 = vadd.f32 %v574_v33, %v1646_v39  ;;  %v631_v31 = vshrl.u32 %v630_v58, 7  ;;  %vm644_vm1 = vcmp.lt.s32.totalorder %v630_v58, 256 }
 0x14c   : > { %v772_v9 = vadd.f32 %v771_v49, %v698_v5  ;;  %v612_v14 = vadd.f32 %v611_v36, %v1648_v41  ;;  %v629_v45 = vunpack.c.0.s8 %v628_v54 }
 0x14d   : > { %v736_v22 = vadd.f32 %v735_v7, %v699_v10  ;;  %v576_v12 = vadd.f32 %v575_v6, %v1653_v46 }
 0x14e   : > { %v773_v23 = vadd.f32 %v772_v9, %v700_v16  ;;  %v613_v13 = vadd.f32 %v612_v14, %v1655_v47  ;;  %v707_v47 = vmul.f32 %v1678_v51, %v1678_v51  ;;  %v632_v6 = vsub.s32 %v629_v45, %v631_v31 }
 0x14f   : > { %v737_v25 = vadd.f32 %v736_v22, %v701_v37  ;;  %v577_v39 = vadd.f32 %v576_v12, %v1662_v8  ;;  %v706_v8 = vmul.f32 %v1671_v19, %v1671_v19 }
 0x150   : > { %v774_v57 = vadd.f32 %v773_v23, %v702_v24  ;;  %v614_v41 = vadd.f32 %v613_v13, %v1664_v11 }
 0x151   : > { %v738_v26 = vadd.f32 %v737_v25, %v703_v55  ;;  %v578_v46 = vadd.f32 %v577_v39, %v1669_v18 }
 0x152   : > { %v775_v28 = vadd.f32 %v774_v57, %v704_v60  ;;  %v615_v29 = vadd.f32 %v614_v41, %v1671_v19  ;;  %v710_v19 = vmul.f32 %v1698_v3, %v1698_v3 }
 0x153   : > { %v739_v32 = vadd.f32 %v738_v26, %v705_v27  ;;  %v579_v11 = vadd.f32 %v578_v46, %v1678_v51 }
 0x154   : > { %v776_v34 = vadd.f32 %v775_v28, %v706_v8  ;;  %v616_v35 = vadd.f32 %v615_v29, %v1685_v56 }
 0x155   : > { %v740_v38 = vadd.f32 %v739_v32, %v707_v47  ;;  %v580_v18 = vadd.f32 %v579_v11, %v1693_v0 }
 0x156   : > { %v777_v40 = vadd.f32 %v776_v34, %v708_v30  ;;  %v617_v42 = vadd.f32 %v616_v35, %v1698_v3 }
 0x157   : > { %v581_v15 = vrot.slane %v580_v18, 4  ;;  %v741_v44 = vadd.f32 %v740_v38, %v709_v61 }
 0x158   : > { %v618_v50 = vrot.slane %v617_v42, 4  ;;  %v778_v17 = vadd.f32 %v777_v40, %v710_v19 }
 0x159   : > { %v582_v51 = vadd.f32 %v581_v15, %v580_v18  ;;  %v742_v52 = vrot.slane %v741_v44, 4 }
 0x15a   : > { %v619_v53 = vadd.f32 %v618_v50, %v617_v42  ;;  %v779_v56 = vrot.slane %v778_v17, 4 }
 0x15b   : > { %v583_v21 = vrot.slane %v582_v51, 2  ;;  %v743_v0 = vadd.f32 %v742_v52, %v741_v44 }
 0x15c   : > { %v620_v59 = vrot.slane %v619_v53, 2  ;;  %v780_v62 = vadd.f32 %v779_v56, %v778_v17 }
 0x15d   : > { %v584_v43 = vadd.f32 %v583_v21, %v582_v51  ;;  %v744_v63 = vrot.slane %v743_v0, 2 }
 0x15e   : > { %v621_v1 = vadd.f32 %v620_v59, %v619_v53  ;;  %v781_v3 = vrot.slane %v780_v62, 2 }
 0x15f   : > { %v585_v2 = vrot.slane %v584_v43, 1  ;;  %v745_v48 = vadd.f32 %v744_v63, %v743_v0 }
 0x160   : > { %v622_v33 = vrot.slane %v621_v1, 1  ;;  %v782_v4 = vadd.f32 %v781_v3, %v780_v62 }
 0x161   : > { %v586_v49 = vadd.f32 %v585_v2, %v584_v43  ;;  %v746_v36 = vrot.slane %v745_v48, 1 }
 0x162   : > { %v623_v5 = vadd.f32 %v622_v33, %v621_v1  ;;  %v783_v7 = vrot.slane %v782_v4, 1 }
 0x163   : > { %v747_v10 = vadd.f32 %v746_v36, %v745_v48 }
 0x164   : > { %v626_v9 = vcombine.low %v586_v49, %v623_v5  ;;  %v784_v14 = vadd.f32 %v783_v7, %v782_v4 }
 0x166   : > { %v787_v16 = vcombine.low %v747_v10, %v784_v14  ;;  %v633_v22 = vrot.slane %v626_v9, %v632_v6 }
 0x168   : > { %v640_v12 = vrot.slane %v633_v22, %v632_v6  ;;  %v794_v37 = vrot.slane %v787_v16, %v632_v6 }
 0x16a   : > { %646 = vst.msk [vmem:[%s175_s17] ss:$2 sm:$0x3] %vm644_vm1, %v640_v12  ;;  %v801_v23 = vrot.slane %v794_v37, %v632_v6 }
 0x16c   : > { %1199 = vst.msk [vmem:[%s175_s17 + $0x1] ss:$2 sm:$0x3] %vm644_vm1, %v801_v23 }
 0x16d   : > { %1386 = shalt.err (!%p1383_p9)
}
 0x16e   : > { %s1387_s6 = scalar_lea.hbm %s1827_s25, 64  ;;  %s1391_s5 = scalar_lea.hbm %s1873_s3, 128 }
 0x16f   : > { %p1388_p10 = scmp.ne.s32.totalorder %s1827_s25, %s1387_s6  ;;  %p1392_p13 = scmp.lt.u32.totalorder %s1827_s25, %s1873_s3 }
 0x170   : > { %p1393_p0 = scmp.lt.u32.totalorder %s1391_s5, %s1387_s6  ;;  %p1395_p2 = scmp.lt.u32.totalorder %s1387_s6, %s1827_s25 }
 0x171   : > { %p1389_p11 = pnand %p1388_p10, %p1505_p5 }
 0x172   : > { %p1394_p1 = por %p1393_p0, %p1392_p13 }
 0x173   : > { %p1390_p12 = pneg %p1389_p11 }
 0x174   : > { %p1396_p3 = por %p1395_p2, %p1394_p1 }
 0x176   : > { %p1397_p4 = pnand %p1396_p3, %p1390_p12 }
 0x178   : > { %1400 = shalt.err (!%p1397_p4)
}
 0x179   : > { %1279 = dma.vmem_to_hbm [thread:$0]  (%p1505_p5), %s1829_s19, 64, %s1827_s25, %s1035_s26  }
 0x17a PF: > { %p1289_p7 = scmp.ge.s32.totalorder %s1439_s15, 2  ;;  %s1078_s9 = sand.u32 1, %s1427_s12  }
 0x17b   : > { %s1079_s10 = scalar_lea.sflag [#allocation3], %s1078_s9 }
 0x17c   : > { %p1283_p8 = pnand %p1289_p7, %p1509_p6 }
 0x17e   : > { %1418 = dma.done.wait (!%p1283_p8), %s1079_s10, 4096  }
 0x17f   : > { %1420 = vsyncadd (!%p1283_p8), %s1079_s10, 4294963200  ;;  %s1088_s11 = scalar_lea.sflag [#allocation5], %s1078_s9 }
 0x180   : > { %1422 = dma.done.wait (!%p1283_p8), %s1088_s11, 64  }
 0x181   : > { %1424 = vsyncadd (!%p1283_p8), %s1088_s11, 4294967232  ;;  %p17_p5 = scmp.ge.s32.totalorder %s1492_s18, 4   ;;  %s1876_s12 = smov %s1431_s13 }
 0x182   : > { %s1877_s13 = smov %s1435_s14  ;;  %s1878_s14 = smov %s1503_s21 }
 0x183   : > { %s1879_s15 = smov %s1492_s18  ;;  %19 = sbr.rel (!%p17_p5) target bundleno = 5 (0x5), region = 81 }
 0x18a   :  { %1093 = vsyncpa [#allocation3], 1 }
 0x18b   :  { %1095 = vsyncpa [#allocation3 + $0x1], 1 }
 0x18c   :  { %1096 = vsyncpa [#allocation5], 1 }
 0x18d   :  { %1098 = vsyncpa [#allocation5 + $0x1], 1 }

</bundles_post_ra>
